<compile_context>
chip_gen: v7x
topology: tpu7x:2x2x1
jax: 0.10.0
libtpu: 0.0.40
codegen_flags: <defaults>
</compile_context>

<pallas_src>
import jax
import jax.numpy as jnp
from jax.experimental import pallas as pl
from jax.experimental.pallas import tpu as pltpu

NEGATIVE_SLOPE = 0.01  # PyTorch nn.LeakyReLU() default


def _pool_kernel(x_ref, w_ref, b_ref, o_ref):
    # x_ref: (K, tm) patch tile (K = C_in*2*2), w_ref: (C_out, K), b_ref: (C_out, 1),
    # o_ref: (C_out, tm)  -- lane axis is the long spatial axis => dense, unmasked stores.
    acc = jnp.dot(w_ref[...], x_ref[...], preferred_element_type=jnp.float32)
    acc = acc + b_ref[...]
    o_ref[...] = jnp.where(acc > 0, acc, NEGATIVE_SLOPE * acc).astype(o_ref.dtype)


def _pick_tile(spatial, K, C, *, bytes_per_el=4, vmem_budget=24 * 1024 * 1024):
    """Largest legal spatial tile: either the full spatial extent, or a multiple of 128
    that divides it, sized so double-buffered in/out blocks stay within `vmem_budget`
    (budget chosen conservatively so the same tiling fits v7x's 64 MiB VMEM)."""
    denom = 2 * (K + C) * bytes_per_el        # 2 buffers x ((K,tm) input + (C,tm) output)
    max_tm = max(128, vmem_budget // denom)
    if spatial <= max_tm:
        return spatial                         # whole image in one block (full-dim => legal)
    t = (max_tm // 128) * 128                  # prefer lane-dense multiples of 128
    while t >= 128:
        if spatial % t == 0:
            return t
        t -= 128
    return spatial                             # fallback: one block per image


def pooling_layer(x, weight, bias, *, vmem_budget_bytes=24 * 1024 * 1024):
    """x: (N, C, H, W); weight: (C, C, 2, 2); bias: (C,). Returns (N, C, H//2, W//2)."""
    N, C_in, H, W = x.shape
    C_out = weight.shape[0]
    Ho, Wo = H // 2, W // 2
    S = Ho * Wo
    K = C_in * 4

    # Stride-2 / kernel-2 conv silently drops a trailing odd row/col; do the same.
    x = x[:, :, : 2 * Ho, : 2 * Wo]

    # Space-to-depth, already transposed so the GEMM's long (spatial) axis is last:
    #   patches_t[n, ci*4 + kh*2 + kw, i*Wo + j] = x[n, ci, 2i+kh, 2j+kw]
    # allow_input_fusion below lets XLA fuse this relayout into the kernel's input DMA
    # instead of writing+re-reading a full copy of x in HBM.
    patches_t = (
        x.reshape(N, C_in, Ho, 2, Wo, 2)
        .transpose(0, 1, 3, 5, 2, 4)
        .reshape(N, K, S)
    )
    w2 = weight.reshape(C_out, K)              # (C_out, (ci, kh, kw)) — matches K ordering
    b2 = bias.reshape(C_out, 1)

    tm = _pick_tile(S, K, C_out, vmem_budget=vmem_budget_bytes)
    n_tiles = S // tm
    # Keep >= 2 grid steps for v7x's two TensorCores when it doesn't cost lane density.
    if N * n_tiles < 2 and tm % 256 == 0:
        tm //= 2
        n_tiles = S // tm

    flops = 2 * N * S * K * C_out
    bytes_accessed = 4 * (N * S * K + K * C_out + C_out + N * S * C_out)

    out_flat = pl.pallas_call(
        _pool_kernel,
        out_shape=jax.ShapeDtypeStruct((N, C_out, S), x.dtype),
        grid_spec=pltpu.PrefetchScalarGridSpec(
            num_scalar_prefetch=0,
            grid=(N, n_tiles),
            in_specs=[
                pl.BlockSpec((None, K, tm), lambda n, t: (n, 0, t)),   # patch tile
                pl.BlockSpec((C_out, K), lambda n, t: (0, 0)),          # resident weight
                pl.BlockSpec((C_out, 1), lambda n, t: (0, 0)),          # resident bias
            ],
            out_specs=pl.BlockSpec((None, C_out, tm), lambda n, t: (n, 0, t)),
        ),
        compiler_params=pltpu.CompilerParams(
            dimension_semantics=("parallel", "parallel"),
            vmem_limit_bytes=64 * 1024 * 1024,
            allow_input_fusion=[True, False, False],
        ),
        cost_estimate=pl.CostEstimate(
            flops=flops, transcendentals=0, bytes_accessed=bytes_accessed
        ),
    )(patches_t, w2, b2)

    # (N, C, Ho*Wo) -> (N, C, Ho, Wo): contiguous split, no transpose / extra HBM pass.
    return out_flat.reshape(N, C_out, Ho, Wo)


def _reference(x, weight, bias):
    y = jax.lax.conv_general_dilated(
        x, weight, window_strides=(2, 2), padding="VALID",
        dimension_numbers=("NCHW", "OIHW", "NCHW"),
    ) + bias.reshape(1, -1, 1, 1)
    return jnp.where(y > 0, y, NEGATIVE_SLOPE * y)


if __name__ == "__main__":
    key = jax.random.PRNGKey(0)
    k_x, k_w, k_b = jax.random.split(key, 3)

    N, C, H, W = 2, 4, 16, 16
    x = jax.random.normal(k_x, (N, C, H, W), dtype=jnp.float32)

    # Deterministic parameter init (mimic PyTorch Conv2d uniform(-1/sqrt(fan_in), ...))
    fan_in = C * 2 * 2
    bound = 1.0 / jnp.sqrt(fan_in)
    weight = jax.random.uniform(k_w, (C, C, 2, 2), jnp.float32, -bound, bound)
    bias = jax.random.uniform(k_b, (C,), jnp.float32, -bound, bound)

    out = pooling_layer(x, weight, bias)
    out = jax.block_until_ready(out)

    ref = jax.block_until_ready(_reference(x, weight, bias))
    assert out.shape == (N, C, H // 2, W // 2)
    assert jnp.allclose(out, ref, atol=1e-5, rtol=1e-5)

    print("KERNEL_OK")
</pallas_src>

<mosaic_0001>
module attributes {stable_mosaic.version = 11 : i64} {
  func.func @_pool_kernel(%arg0: i32, %arg1: i32, %arg2: memref<1x16x64xf32, #tpu.memory_space<vmem>>, %arg3: memref<4x16xf32, #tpu.memory_space<vmem>>, %arg4: memref<4x1xf32, #tpu.memory_space<vmem>>, %arg5: memref<1x4x64xf32, #tpu.memory_space<vmem>>) attributes {dimension_semantics = [#tpu.dimension_semantics<parallel>, #tpu.dimension_semantics<parallel>], iteration_bounds = array<i64: 2, 1>, scalar_prefetch = 0 : i64, scratch_operands = 0 : i64, tpu.core_type = #tpu.core_type<tc>, window_params = [{transform_indices = @transform_0, window_bounds = array<i64: 1, 16, 64>}, {pipeline_mode = #tpu.pipeline_mode<synchronous>, transform_indices = @transform_1, window_bounds = array<i64: 4, 16>}, {pipeline_mode = #tpu.pipeline_mode<synchronous>, transform_indices = @transform_2, window_bounds = array<i64: 4, 1>}, {transform_indices = @transform_3, window_bounds = array<i64: 1, 4, 64>}]} {
    %c0 = arith.constant 0 : index
    %c0_0 = arith.constant 0 : index
    %0 = vector.load %arg3[%c0, %c0_0] : memref<4x16xf32, #tpu.memory_space<vmem>>, vector<4x16xf32>
    %c0_1 = arith.constant 0 : index
    %c0_2 = arith.constant 0 : index
    %c0_3 = arith.constant 0 : index
    %1 = vector.load %arg2[%c0_1, %c0_2, %c0_3] : memref<1x16x64xf32, #tpu.memory_space<vmem>>, vector<1x16x64xf32>
    %2 = vector.shape_cast %1 : vector<1x16x64xf32> to vector<16x64xf32>
    %cst = arith.constant dense<0.000000e+00> : vector<4x64xf32>
    %3 = tpu.matmul %0, %2, %cst {dimension_numbers = #tpu.dot_dimension_numbers<[1], [0], [0], [1], [0, 0, 1, 1], [], []>} : vector<4x16xf32>, vector<16x64xf32>, vector<4x64xf32> -> vector<4x64xf32>
    %c0_4 = arith.constant 0 : index
    %c0_5 = arith.constant 0 : index
    %4 = vector.load %arg4[%c0_4, %c0_5] : memref<4x1xf32, #tpu.memory_space<vmem>>, vector<4x1xf32>
    %5 = vector.broadcast %4 : vector<4x1xf32> to vector<4x64xf32>
    %6 = arith.addf %3, %5 : vector<4x64xf32>
    %cst_6 = arith.constant 0.000000e+00 : f32
    %7 = vector.broadcast %cst_6 : f32 to vector<4x64xf32>
    %8 = arith.cmpf ogt, %6, %7 : vector<4x64xf32>
    %cst_7 = arith.constant 0.00999999977 : f32
    %9 = vector.broadcast %cst_7 : f32 to vector<4x64xf32>
    %10 = arith.mulf %9, %6 : vector<4x64xf32>
    %11 = arith.select %8, %6, %10 : vector<4x64xi1>, vector<4x64xf32>
    %c0_8 = arith.constant 0 : index
    %c0_9 = arith.constant 0 : index
    %c0_10 = arith.constant 0 : index
    %12 = vector.load %arg5[%c0_8, %c0_9, %c0_10] : memref<1x4x64xf32, #tpu.memory_space<vmem>>, vector<1x4x64xf32>
    %13 = vector.shape_cast %12 : vector<1x4x64xf32> to vector<4x64xf32>
    %14 = vector.shape_cast %11 : vector<4x64xf32> to vector<1x4x64xf32>
    tpu.vector_store %arg5[%c0_8, %c0_9, %c0_10], %14 {strides = array<i32>} : memref<1x4x64xf32, #tpu.memory_space<vmem>>, vector<1x4x64xf32>,
    return
  }
  func.func @transform_0(%arg0: i32, %arg1: i32) -> (i32, i32, i32) {
    %c0_i32 = arith.constant 0 : i32
    %c0_i32_0 = arith.constant 0 : i32
    return %arg0, %c0_i32, %arg1 : i32, i32, i32
  }
  func.func @transform_1(%arg0: i32, %arg1: i32) -> (i32, i32) {
    %c0_i32 = arith.constant 0 : i32
    %c0_i32_0 = arith.constant 0 : i32
    %c0_i32_1 = arith.constant 0 : i32
    return %c0_i32, %c0_i32_0 : i32, i32
  }
  func.func @transform_2(%arg0: i32, %arg1: i32) -> (i32, i32) {
    %c0_i32 = arith.constant 0 : i32
    %c0_i32_0 = arith.constant 0 : i32
    %c0_i32_1 = arith.constant 0 : i32
    return %c0_i32, %c0_i32_0 : i32, i32
  }
  func.func @transform_3(%arg0: i32, %arg1: i32) -> (i32, i32, i32) {
    %c0_i32 = arith.constant 0 : i32
    %c0_i32_0 = arith.constant 0 : i32
    return %arg0, %c0_i32, %arg1 : i32, i32, i32
  }
}

</mosaic_0001>

<bundles_post_ra>
// kernel: tpu_custom_call.1
= control target key start
LH: loop header
LB: loop body
LE: loop exit
PB: predicated region body
PF: predicated region fallthrough
CT: control target
= control target key end

     0   :  { %8 = vsyncpa [#allocation3], 0  ;;  %s1008_s0 = inlined_call_operand.hbm [shape: f32[2,16,64], index: 0, kind: input, shape index: {}]   ;;  %s1009_s1 = inlined_call_operand.hbm [shape: f32[4,16], index: 1, kind: input, shape index: {}]   ;;  %s1010_s2 = inlined_call_operand.hbm [shape: f32[4,1], index: 2, kind: input, shape index: {}]   ;;  %s1011_s3 = inlined_call_operand.hbm [shape: f32[2,4,64], index: 3, kind: output, shape index: {}]  }
   0x1   :  { %10 = vsyncpa [#allocation3 + $0x1], 0 }
   0x2   :  { %11 = vsyncpa [#allocation6], 0 }
   0x3   :  { %12 = vsyncpa [#allocation4], 0 }
   0x4   :  { %14 = vsyncpa [#allocation4 + $0x1], 0  ;;  %s761_s12 = smov 0   ;;  %s763_s13 = smov 0  }
   0x5   :  { %s765_s14 = smov 0   ;;  %s767_s15 = smov 0  }
   0x6   :  { %s769_s16 = smov 0   ;;  %s771_s17 = smov 0  }
   0x7 LB: > { %s434_s18 = sadd.s32 4294967295, %s729_s17   ;;  %s435_s19 = sadd.s32 4294967294, %s729_s17   ;;  %s729_s17 = sphi %s771_s17, %s20_s17   ;;  %s725_s16 = sphi %s769_s16, %s1037_s16   ;;  %s721_s15 = sphi %s767_s15, %s1036_s15   ;;  %s717_s14 = sphi %s765_s14, %s1035_s14   ;;  %s713_s13 = sphi %s763_s13, %s1034_s13   ;;  %s709_s12 = sphi %s761_s12, %s1033_s12  }
   0x8   : > { %s41_s20 = sadd.s32 1, %s717_s14  ;;  %p48_p0 = scmp.ne.s32.totalorder %s717_s14, %s713_s13 }
   0x9   : > { %p49_p1 = scmp.eq.s32.totalorder %s729_s17, 0  ;;  %p54_p2 = scmp.ne.s32.totalorder %s713_s13, %s709_s12 }
   0xa   : > { %p799_p3 = scmp.eq.s32.totalorder %s434_s18, 0  ;;  %p122_p4 = scmp.eq.s32.totalorder %s434_s18, 1 }
   0xb   : > { %p803_p5 = por %p49_p1, %p48_p0  ;;  %p128_p6 = scmp.eq.s32.totalorder %s435_s19, 1 }
   0xc   : > { %s1018_s21 = scalar_select %p799_p3, 1, 0 }
   0xd   : > { %p809_p7 = por %p799_p3, %p54_p2  ;;  %p813_p8 = por %p122_p4, %p48_p0 }
   0xe   : > { %p817_p9 = por %p128_p6, %p54_p2  ;;  %p436_p10 = scmp.ge.s32.totalorder %s729_s17, 1 }
   0xf   : > { %s1020_s23 = scalar_select %p809_p7, 1, 0 }
  0x10   : > { %s1021_s24 = scalar_select %p813_p8, 1, 0 }
  0x11   : > { %s1022_s25 = scalar_select %p817_p9, 1, 0 }
  0x12   : > { %p135_p11 = scmp.lt.s32.totalorder %s729_s17, 3  ;;  %s731_s27 = smov [#allocation5]  }
  0x13   : > { %s148_s28 = sshll.u32 %s731_s27, 4  ;;  %p496_p1 = scmp.lt.s32.totalorder %s729_s17, 2  ;;  %s149_s28 = int_to_ptr.vmem [resolvable:$true] %s148_s28 }
  0x14   : > { %p824_p13 = pnand %p436_p10, %p135_p11  ;;  %s732_s30 = smov [#allocation7]  }
  0x15   : > { %p833_p4 = pnand %p496_p1, %p803_p5  ;;  %s159_s4 = sshll.u32 %s732_s30, 4  ;;  %s843_s4 = int_to_ptr.vmem [resolvable:$true] %s159_s4 }
  0x16   : > { %s1023_s26 = scalar_select %p824_p13, 1, 0 }
  0x17   : > { %p479_p0 = pneg %p824_p13  ;;  %s557_s8 = scalar_lea.hbm %s1009_s1, 64 }
  0x18   : > { %s1024_s29 = scalar_select %p833_p4, 1, 0 }
  0x19   : > { %p839_p2 = pnand %p479_p0, %p799_p3  ;;  %p558_p5 = scmp.ne.s32.totalorder %s1009_s1, %s557_s8 }
  0x1a   : > { %p564_p1 = scmp.lt.u32.totalorder %s557_s8, %s1009_s1 }
  0x1b   : > { %p559_p6 = pneg %p839_p2 }
  0x1d   : > { %p560_p10 = pnand %p559_p6, %p558_p5 }
  0x1f   : > { %p561_p11 = pneg %p560_p10 }
  0x21   : > { %p566_p0 = pnand %p564_p1, %p561_p11 }
  0x23   : > { %569 = shalt.err (!%p566_p0)
}
  0x24   : > { %s570_s19 = scalar_lea.vmem %s149_s28, 64  ;;  %p578_p3 = scmp.lt.s32.totalorder %s149_s28, %s149_s28 }
  0x25   : > { %p571_p12 = scmp.ne.s32.totalorder %s149_s28, %s570_s19  ;;  %p579_p7 = scmp.lt.s32.totalorder %s570_s19, %s570_s19 }
  0x27   : > { %p573_p9 = pnand %p571_p12, %p559_p6  ;;  %p580_p13 = por %p579_p7, %p578_p3 }
  0x29   : > { %p574_p8 = pneg %p573_p9 }
  0x2b   : > { %p581_p4 = pnand %p580_p13, %p574_p8 }
  0x2d   : > { %584 = shalt.err (!%p581_p4)
}
  0x2e   : > { %482 = dma.hbm_to_vmem [thread:$0]  (!%p839_p2), %s1009_s1, 64, %s149_s28, [#allocation6]  }
  0x2f   : > { %s585_s7 = scalar_lea.hbm %s1010_s2, 64 }
  0x30   : > { %p586_p9 = scmp.ne.s32.totalorder %s1010_s2, %s585_s7  ;;  %p592_p8 = scmp.lt.u32.totalorder %s585_s7, %s1010_s2 }
  0x32   : > { %p588_p3 = pnand %p586_p9, %p559_p6 }
  0x34   : > { %p589_p7 = pneg %p588_p3 }
  0x36   : > { %p594_p12 = pnand %p592_p8, %p589_p7 }
  0x38   : > { %597 = shalt.err (!%p594_p12)
}
  0x39   : > { %s598_s28 = scalar_lea.vmem %s843_s4, 64  ;;  %p606_p10 = scmp.lt.s32.totalorder %s843_s4, %s843_s4 }
  0x3a   : > { %p599_p13 = scmp.ne.s32.totalorder %s843_s4, %s598_s28  ;;  %p607_p11 = scmp.lt.s32.totalorder %s598_s28, %s598_s28 }
  0x3c   : > { %p601_p4 = pnand %p599_p13, %p559_p6  ;;  %p608_p1 = por %p607_p11, %p606_p10 }
  0x3e   : > { %p602_p5 = pneg %p601_p4 }
  0x40   : > { %p609_p0 = pnand %p608_p1, %p602_p5 }
  0x42   : > { %612 = shalt.err (!%p609_p0)
}
  0x43   : > { %485 = dma.hbm_to_vmem [thread:$0]  (!%p839_p2), %s1010_s2, 64, %s843_s4, [#allocation6]  }
  0x44   : > { %s32_s22 = sadd.s32 1, %s725_s16  ;;  %s170_s27 = sand.u32 1, %s717_s14  }
  0x45   : > { %p34_p6 = scmp.ge.s32.totalorder %s32_s22, 2  ;;  %s440_s30 = sshll.u32 %s170_s27, 4 }
  0x46   : > { %s453_s6 = sshll.u32 %s725_s16, 8  ;;  %s174_s4 = scalar_lea.vmem [#allocation2], %s440_s30 }
  0x47   : > { %s1039_s22 = smov (%p34_p6, %s32_s22), 0  ;;  %s900_s8 = scalar_lea.hbm %s1008_s0, %s453_s6 }
  0x48   : > { %s36_s9 = ssub.s32 %s725_s16, %s1039_s22  ;;  %s182_s10 = sshll.u32 %s174_s4, 4  ;;  %s904_s10 = int_to_ptr.vmem [resolvable:$true] %s182_s10 }
  0x49   : > { %p39_p2 = scmp.eq.s32.totalorder %s36_s9, 0  ;;  %s911_s28 = scalar_lea.sflag [#allocation3], %s170_s27 }
  0x4a   : > { %s613_s18 = scalar_lea.hbm %s900_s8, 256  ;;  %p1026_p3 = scmp.ne.s32.totalorder %s1024_s29, 0 }
  0x4b   : > { %s909_s11 = scalar_select %p39_p2, %s717_s14, %s41_s20  }
  0x4c   : > { %p614_p9 = scmp.ne.s32.totalorder %s900_s8, %s613_s18  ;;  %p615_p7 = pneg %p1026_p3 }
  0x4d   : > { %s618_s30 = scalar_lea.hbm %s1008_s0, 512  ;;  %p619_p13 = scmp.lt.u32.totalorder %s900_s8, %s1008_s0 }
  0x4e   : > { %p616_p8 = pnand %p615_p7, %p614_p9  ;;  %p620_p4 = scmp.lt.u32.totalorder %s618_s30, %s613_s18 }
  0x4f   : > { %p622_p10 = scmp.lt.u32.totalorder %s613_s18, %s900_s8 }
  0x50   : > { %p617_p12 = pneg %p616_p8  ;;  %p621_p5 = por %p620_p4, %p619_p13 }
  0x52   : > { %p623_p11 = por %p622_p10, %p621_p5 }
  0x54   : > { %p624_p1 = pnand %p623_p11, %p617_p12 }
  0x56   : > { %627 = shalt.err (!%p624_p1)
}
  0x57   : > { %s628_s20 = scalar_lea.vmem %s904_s10, 256  ;;  %s733_s27 = smov [#allocation2]  }
  0x58   : > { %p629_p0 = scmp.ne.s32.totalorder %s904_s10, %s628_s20  ;;  %s633_s9 = sshll.u32 %s733_s27, 4  ;;  %s634_s9 = int_to_ptr.vmem [resolvable:$false] %s633_s9 }
  0x59   : > { %s635_s4 = scalar_lea.vmem %s634_s9, 512  ;;  %p636_p9 = scmp.lt.s32.totalorder %s904_s10, %s634_s9 }
  0x5a   : > { %p631_p6 = pnand %p629_p0, %p615_p7  ;;  %p637_p8 = scmp.lt.s32.totalorder %s635_s4, %s628_s20 }
  0x5c   : > { %p632_p2 = pneg %p631_p6  ;;  %p638_p13 = por %p637_p8, %p636_p9 }
  0x5e   : > { %p639_p4 = pnand %p638_p13, %p632_p2 }
  0x60   : > { %642 = shalt.err (!%p639_p4)
}
  0x61   : > { %s734_s18 = smov 128   ;;  %s735_s19 = smov 8  }
  0x62   : > { %489 = dma.hbm_to_vmem [thread:$0]  (!%p1026_p3), %s900_s8, 256, %s904_s10, %s911_s28, %s734_s18, %s734_s18, %s735_s19  }
  0x63   : > { %p1027_p7 = scmp.ne.s32.totalorder %s1023_s26, 0 }
  0x64   : > { %s942_s6 = sand.u32 (!%p1027_p7), 1, %s713_s13   ;;  %p1028_p12 = scmp.ne.s32.totalorder (!%p1027_p7), %s1020_s23, 0 }
  0x65   : > { %194 = sbr.rel (%p1027_p7) target bundleno = 350 (0x15e), region = 32  ;;  %s444_s30 = sshll.u32 (!%p1027_p7), %s942_s6, 4 }
  0x66   : > { %s197_s5 = scalar_lea.sflag (!%p1027_p7), [#allocation3], %s942_s6  ;;  %s200_s7 = scalar_lea.vmem (!%p1027_p7), [#allocation2], %s444_s30 }
  0x6c   : > { %696 = dma.done.wait (%p1028_p12), %s197_s5, 256  }
  0x6d   : > { %698 = vsyncadd (%p1028_p12), %s197_s5, 4294967040  ;;  %p1029_p5 = scmp.ne.s32.totalorder %s1018_s21, 0 }
  0x6f   : > { %700 = dma.done.wait (%p1029_p5), [#allocation6], 128  }
  0x70   : > { %702 = vsyncadd (%p1029_p5), [#allocation6], 4294967168  ;;  %v736_v0 = vmov 0.0|0.0   ;;  %vm737_vm0 = vmmov 0   ;;  %v738_v1 = vmov 0.0   ;;  %v739_v2 = vmov 0  }
  0x71   : > { %464 = vmatprep.subr.bf16.mxu0 %v736_v0  ;;  %461 = vmatprep.mubr.msk.f32.mxu0 %vm737_vm0, %v738_v1  ;;  %v232_v3 = vld [vmem:[%s200_s7] sm:$0xff]  ;;  %v233_v4 = vld [vmem:[%s200_s7 + $0x8] sm:$0xff]  ;;  %vm240_vm1 = vcmask 130048   ;;  %s447_s21 = sshll.u32 %s942_s6, 2  ;;  %s450_s23 = sshll.u32 %s721_s15, 6  ;;  %vm317_vm3 = vcmask 519168  }
  0x72   : > { %556 = vset.pattern.permute.xlu0 %v739_v2  ;;  %v465_v5 = vpack.c.bf16 %v233_v4, %v232_v3  ;;  %v234_v6 = vld [vmem:[#allocation7] sm:$0xf]  ;;  %v231_v7 = vld [vmem:[#allocation5] sm:$0xf]  ;;  %s230_s26 = scalar_lea.vmem [#allocation8], %s447_s21  ;;  %s959_s28 = scalar_lea.hbm %s1011_s3, %s450_s23 }
  0x73   : > { %237 = vperm.xlu0 %556, %v234_v6   ;;  %s334_s29 = sshll.u32 %s230_s26, 4  ;;  %s320_s20 = scalar_lea.sflag [#allocation4], %s942_s6  ;;  %s961_s29 = int_to_ptr.vmem [resolvable:$true] %s334_s29 }
  0x74   : > { %466 = vmatpush3.bf16.msra.mxu0 %v465_v5  ;;  %s643_s27 = scalar_lea.vmem %s961_s29, 64  ;;  %p1030_p10 = scmp.ne.s32.totalorder %s1021_s24, 0 }
  0x75   : > { %p644_p3 = scmp.ne.s32.totalorder %s961_s29, %s643_s27  ;;  %s740_s15 = smov [#allocation8]  }
  0x76   : > { %s647_s9 = sshll.u32 %s740_s15, 4  ;;  %s648_s9 = int_to_ptr.vmem [resolvable:$false] %s647_s9 }
  0x77   : > { %462 = vmatmul.mubr.msk.f32.vlgmr.msra.gmra.mrb[0].mxu0 %vm240_vm1, %v231_v7  ;;  %p645_p11 = pnand %p644_p3, %p1030_p10  ;;  %s649_s4 = scalar_lea.vmem %s648_s9, 128 }
  0x78   : > { %p650_p0 = scmp.lt.s32.totalorder %s961_s29, %s648_s9  ;;  %p651_p6 = scmp.lt.s32.totalorder %s649_s4, %s643_s27 }
  0x79   : > { %p646_p1 = pneg %p645_p11 }
  0x7a   : > { %p652_p2 = por %p651_p6, %p650_p0 }
  0x7c   : > { %p653_p9 = pnand %p652_p2, %p646_p1 }
  0xf2   : > { %v238_v8 = vpop.permute.xlu0 %237 }
 0x14a   : > { %v310_v9 = vpop.f32.mrb[0].mxu0 }
 0x14b   : > { %v311_v10 = vadd.f32 %v310_v9, %v238_v8  ;;  %v463_v11 = vpop.f32.mrb[1].mxu0 }
 0x14d   : > { %vm314_vm2 = vcmp.gt.f32.partialorder %v311_v10, 0.0  ;;  %v315_v12 = vmul.f32 0.01, %v311_v10 }
 0x14f   : > { %v316_v13 = vsel %vm314_vm2, %v311_v10, %v315_v12 }
 0x150   : > { %318 = vst.msk [vmem:[%s230_s26] sm:$0xf] %vm317_vm3, %v316_v13 }
 0x151   : > { %656 = shalt.err (!%p653_p9)
}
 0x152   : > { %s657_s18 = scalar_lea.hbm %s959_s28, 64  ;;  %s661_s30 = scalar_lea.hbm %s1011_s3, 128 }
 0x153   : > { %p658_p8 = scmp.ne.s32.totalorder %s959_s28, %s657_s18  ;;  %p662_p7 = scmp.lt.u32.totalorder %s959_s28, %s1011_s3 }
 0x154   : > { %p663_p12 = scmp.lt.u32.totalorder %s661_s30, %s657_s18  ;;  %p665_p3 = scmp.lt.u32.totalorder %s657_s18, %s959_s28 }
 0x155   : > { %p659_p13 = pnand %p658_p8, %p1030_p10 }
 0x156   : > { %p664_p5 = por %p663_p12, %p662_p7 }
 0x157   : > { %p660_p4 = pneg %p659_p13 }
 0x158   : > { %p666_p11 = por %p665_p3, %p664_p5 }
 0x15a   : > { %p667_p1 = pnand %p666_p11, %p660_p4 }
 0x15c   : > { %670 = shalt.err (!%p667_p1)
}
 0x15d   : > { %477 = dma.vmem_to_hbm [thread:$0]  (%p1030_p10), %s961_s29, 64, %s959_s28, %s320_s20  }
 0x15e PF: > { %s346_s21 = sand.u32 1, %s709_s12   ;;  %p1031_p0 = scmp.ne.s32.totalorder %s1022_s25, 0 }
 0x15f   : > { %p1032_p6 = scmp.ge.s32.totalorder %s729_s17, 2  ;;  %s347_s23 = scalar_lea.sflag [#allocation4], %s346_s21 }
 0x161   : > { %p491_p2 = pnand %p1032_p6, %p1031_p0 }
 0x163   : > { %704 = dma.done.wait (!%p491_p2), %s347_s23, 64  }
 0x164   : > { %706 = vsyncadd (!%p491_p2), %s347_s23, 4294967232  ;;  %s20_s17 = sadd.s32 1, %s729_s17   ;;  %s1033_s12 = smov %s713_s13 }
 0x165   : > { %p17_p9 = scmp.ge.s32.totalorder %s20_s17, 4   ;;  %s1034_s13 = smov %s717_s14 }
 0x166   : > { %s1035_s14 = smov %s909_s11  ;;  %s1036_s15 = smov %s725_s16 }
 0x167   : > { %s1037_s16 = smov %s1039_s22  ;;  %19 = sbr.rel (!%p17_p9) target bundleno = 7 (0x7), region = 85 }
 0x16e   :  { %352 = vsyncpa [#allocation3], 1 }
 0x16f   :  { %354 = vsyncpa [#allocation3 + $0x1], 1 }
 0x170   :  { %355 = vsyncpa [#allocation6], 1 }
 0x171   :  { %356 = vsyncpa [#allocation4], 1 }
 0x172   :  { %358 = vsyncpa [#allocation4 + $0x1], 1 }

</bundles_post_ra>
